<compile_context>
chip_gen: v7x
topology: tpu7x:2x2x1
jax: 0.10.0
libtpu: 0.0.40
codegen_flags: <defaults>
</compile_context>

<pallas_src>
import jax
import jax.numpy as jnp
from jax.experimental import pallas as pl
from jax.experimental.pallas import tpu as pltpu

EPS = 1e-5
_TAPS = tuple((kh, kw) for kh in range(3) for kw in range(3))


def _pick_tile_h(H, W, target_rows=1024):
    """Largest divisor of H whose (TH*W)-row slab stays within ~1K rows."""
    best = 1
    for d in range(1, H + 1):
        if H % d == 0 and d * W <= target_rows:
            best = d
    return best


# --------------------------------------------------------------------------- #
# Forward pass
# --------------------------------------------------------------------------- #
def resnet_block_forward(x_nchw, params, *, tile_h=None):
    """Pallas implementation of ResnetBlock.forward (dim_in != dim_out case)."""
    N, Cin, H, W = map(int, x_nchw.shape)
    Cout = int(params["w1"].shape[-1])

    TH = _pick_tile_h(H, W) if tile_h is None else int(tile_h)
    assert H % TH == 0, "tile_h must divide H"
    nH = H // TH                    # row tiles per image
    S = N * nH                      # grid size
    ROWS = TH * W                   # flattened (h, w) rows per grid step
    ROWS2 = (TH + 2) * (W + 2)      # rows of the halo'd conv1 slab in kernel 2
    NHW = N * H * W
    f32 = jnp.float32

    x_nhwc = jnp.transpose(x_nchw, (0, 2, 3, 1)).astype(f32)   # NCHW -> NHWC
    w1 = params["w1"].astype(f32).reshape(9, Cin, Cout)        # HWIO -> taps
    w2 = params["w2"].astype(f32).reshape(9, Cout, Cout)
    wid = params["wid"].astype(f32).reshape(Cin, Cout)

    cparams = pltpu.CompilerParams(
        dimension_semantics=("parallel",),       # megacore-shardable on v7x
        vmem_limit_bytes=32 * 1024 * 1024,       # fits v5e/v6e/v7x scoped VMEM
    )

    # Single slab gather: pad x by 2 in H and W, cut (TH+4)-row slabs.  Each
    # slab carries the halo needed by conv1 (inner ring) AND by the fused
    # conv1->bn1->relu->conv2 recompute (outer ring), so x is the only
    # activation ever materialized in slab form.
    xp = jnp.pad(x_nhwc, ((0, 0), (2, 2), (2, 2), (0, 0)))
    xg = jnp.stack([xp[:, i * TH:i * TH + TH + 4] for i in range(nH)], axis=1)
    xg = xg.reshape(S, TH + 4, W + 4, Cin)

    # ---- kernel 1: partial BN stats for bn1 (conv1) and bn_id (1x1 conv) ----
    def stats_kernel(xg_ref, w1_ref, wid_ref, s1_ref, sid_ref):
        xs = xg_ref[0]                                   # (TH+4, W+4, Cin)
        acc = jnp.zeros((ROWS, Cout), f32)
        # 9 unrolled MXU matmuls on in-VMEM shifted views of the slab.
        for t, (kh, kw) in enumerate(_TAPS):
            tap = xs[kh + 1:kh + 1 + TH, kw + 1:kw + 1 + W, :].reshape(ROWS, Cin)
            acc = acc + jnp.dot(tap, w1_ref[t], preferred_element_type=f32)
        # per-tile partial sums (row 0 = sum, row 1 = sumsq) -> disjoint blocks
        s1_ref[...] = jnp.zeros_like(s1_ref)
        s1_ref[0:1, :] = jnp.sum(acc, axis=0, keepdims=True)
        s1_ref[1:2, :] = jnp.sum(acc * acc, axis=0, keepdims=True)
        # identity 1x1 conv: only its batch statistics are needed here.
        xin = xs[2:TH + 2, 2:W + 2, :].reshape(ROWS, Cin)
        ida = jnp.dot(xin, wid_ref[...], preferred_element_type=f32)
        sid_ref[...] = jnp.zeros_like(sid_ref)
        sid_ref[0:1, :] = jnp.sum(ida, axis=0, keepdims=True)
        sid_ref[1:2, :] = jnp.sum(ida * ida, axis=0, keepdims=True)

    s1, sid = pl.pallas_call(
        stats_kernel,
        grid=(S,),
        in_specs=[
            pl.BlockSpec((1, TH + 4, W + 4, Cin), lambda s: (s, 0, 0, 0)),
            pl.BlockSpec((9, Cin, Cout), lambda s: (0, 0, 0)),
            pl.BlockSpec((Cin, Cout), lambda s: (0, 0)),
        ],
        out_specs=(
            pl.BlockSpec((8, Cout), lambda s: (s, 0)),
            pl.BlockSpec((8, Cout), lambda s: (s, 0)),
        ),
        out_shape=(
            jax.ShapeDtypeStruct((S * 8, Cout), f32),
            jax.ShapeDtypeStruct((S * 8, Cout), f32),
        ),
        compiler_params=cparams,
    )(xg, w1, wid)

    # ---- fold batch statistics into per-channel affine (tiny wrapper math) --
    def bn_affine(stats, gamma, beta):
        st = stats.reshape(S, 8, Cout)
        mean = jnp.sum(st[:, 0, :], axis=0) / NHW
        ex2 = jnp.sum(st[:, 1, :], axis=0) / NHW
        var = jnp.maximum(ex2 - mean * mean, 0.0)        # biased batch variance
        scale = gamma.astype(f32) * jax.lax.rsqrt(var + EPS)
        shift = beta.astype(f32) - mean * scale
        return scale.reshape(1, Cout), shift.reshape(1, Cout)

    sc1, sh1 = bn_affine(s1, params["g1"], params["b1"])
    scid, shid = bn_affine(sid, params["gid"], params["bid"])

    # ---- kernel 2: recompute conv1 on halo'd region, bn1+relu in VMEM,
    # ---- re-zero padding ring, conv2; emit y2 + its partial BN stats --------
    def fused_kernel(xg_ref, w1_ref, w2_ref, sc1_ref, sh1_ref, y2_ref, s2_ref):
        hi = pl.program_id(0) % nH
        xs = xg_ref[0]                                   # (TH+4, W+4, Cin)
        # conv1 over the (TH+2, W+2) halo'd output region this tile needs.
        acc1 = jnp.zeros((ROWS2, Cout), f32)
        for t, (kh, kw) in enumerate(_TAPS):
            tap = xs[kh:kh + TH + 2, kw:kw + W + 2, :].reshape(ROWS2, Cin)
            acc1 = acc1 + jnp.dot(tap, w1_ref[t], preferred_element_type=f32)
        z = jnp.maximum(acc1 * sc1_ref[...] + sh1_ref[...], 0.0)
        z = z.reshape(TH + 2, W + 2, Cout)
        # conv2's zero-padding ring must be exactly 0: positions outside the
        # image carry extrapolated conv1 values + bn shift -> mask them.
        row = jax.lax.broadcasted_iota(jnp.int32, (TH + 2, W + 2), 0)
        col = jax.lax.broadcasted_iota(jnp.int32, (TH + 2, W + 2), 1)
        grow = row + hi * TH - 1
        inside = (grow >= 0) & (grow < H) & (col >= 1) & (col <= W)
        z = jnp.where(inside[:, :, None], z, 0.0)
        acc2 = jnp.zeros((ROWS, Cout), f32)
        for t, (kh, kw) in enumerate(_TAPS):
            tap = z[kh:kh + TH, kw:kw + W, :].reshape(ROWS, Cout)
            acc2 = acc2 + jnp.dot(tap, w2_ref[t], preferred_element_type=f32)
        y2_ref[...] = acc2
        s2_ref[...] = jnp.zeros_like(s2_ref)
        s2_ref[0:1, :] = jnp.sum(acc2, axis=0, keepdims=True)
        s2_ref[1:2, :] = jnp.sum(acc2 * acc2, axis=0, keepdims=True)

    y2, s2 = pl.pallas_call(
        fused_kernel,
        grid=(S,),
        in_specs=[
            pl.BlockSpec((1, TH + 4, W + 4, Cin), lambda s: (s, 0, 0, 0)),
            pl.BlockSpec((9, Cin, Cout), lambda s: (0, 0, 0)),
            pl.BlockSpec((9, Cout, Cout), lambda s: (0, 0, 0)),
            pl.BlockSpec((1, Cout), lambda s: (0, 0)),
            pl.BlockSpec((1, Cout), lambda s: (0, 0)),
        ],
        out_specs=(
            pl.BlockSpec((ROWS, Cout), lambda s: (s, 0)),
            pl.BlockSpec((8, Cout), lambda s: (s, 0)),
        ),
        out_shape=(
            jax.ShapeDtypeStruct((NHW, Cout), f32),
            jax.ShapeDtypeStruct((S * 8, Cout), f32),
        ),
        compiler_params=cparams,
    )(xg, w1, w2, sc1, sh1)

    sc2, sh2 = bn_affine(s2, params["g2"], params["b2"])

    # ---- kernel 3: bn2(y2) + bn_id(1x1 conv(x)) -> add -> relu --------------
    def finalize_kernel(y2_ref, x_ref, wid_ref, sc2_ref, sh2_ref,
                        scid_ref, shid_ref, o_ref):
        ident = jnp.dot(x_ref[...], wid_ref[...], preferred_element_type=f32)
        z = y2_ref[...] * sc2_ref[...] + sh2_ref[...]
        idn = ident * scid_ref[...] + shid_ref[...]
        o_ref[...] = jnp.maximum(z + idn, 0.0)

    x_flat = x_nhwc.reshape(NHW, Cin)
    out = pl.pallas_call(
        finalize_kernel,
        grid=(S,),
        in_specs=[
            pl.BlockSpec((ROWS, Cout), lambda s: (s, 0)),
            pl.BlockSpec((ROWS, Cin), lambda s: (s, 0)),
            pl.BlockSpec((Cin, Cout), lambda s: (0, 0)),
            pl.BlockSpec((1, Cout), lambda s: (0, 0)),
            pl.BlockSpec((1, Cout), lambda s: (0, 0)),
            pl.BlockSpec((1, Cout), lambda s: (0, 0)),
            pl.BlockSpec((1, Cout), lambda s: (0, 0)),
        ],
        out_specs=pl.BlockSpec((ROWS, Cout), lambda s: (s, 0)),
        out_shape=jax.ShapeDtypeStruct((NHW, Cout), f32),
        compiler_params=cparams,
    )(y2, x_flat, wid, sc2, sh2, scid, shid)

    return jnp.transpose(out.reshape(N, H, W, Cout), (0, 3, 1, 2))  # -> NCHW


# --------------------------------------------------------------------------- #
# Pure-JAX reference (for correctness check)
# --------------------------------------------------------------------------- #
def _bn_train_ref(x_nhwc, gamma, beta):
    mean = jnp.mean(x_nhwc, axis=(0, 1, 2), keepdims=True)
    var = jnp.mean(jnp.square(x_nhwc - mean), axis=(0, 1, 2), keepdims=True)
    return (x_nhwc - mean) * jax.lax.rsqrt(var + EPS) * gamma + beta


def resnet_block_reference(x_nchw, params):
    x = jnp.transpose(x_nchw, (0, 2, 3, 1)).astype(jnp.float32)

    def conv(inp, w, pad):
        return jax.lax.conv_general_dilated(
            inp, w, (1, 1), [(pad, pad), (pad, pad)],
            dimension_numbers=("NHWC", "HWIO", "NHWC"))

    z = conv(x, params["w1"], 1)
    z = jnp.maximum(_bn_train_ref(z, params["g1"], params["b1"]), 0.0)
    z = conv(z, params["w2"], 1)
    z = _bn_train_ref(z, params["g2"], params["b2"])
    idn = conv(x, params["wid"], 0)
    idn = _bn_train_ref(idn, params["gid"], params["bid"])
    out = jnp.maximum(z + idn, 0.0)
    return jnp.transpose(out, (0, 3, 1, 2))


# --------------------------------------------------------------------------- #
if __name__ == "__main__":
    N, Cin, H, W = 2, 4, 16, 16
    Cout = 8  # dim_in != dim_out -> exercises the 1x1-conv + BN identity branch

    key = jax.random.PRNGKey(0)
    ks = jax.random.split(key, 10)
    params = {
        "w1": jax.random.normal(ks[0], (3, 3, Cin, Cout), jnp.float32)
              * (1.0 / jnp.sqrt(9.0 * Cin)),
        "g1": 1.0 + 0.1 * jax.random.normal(ks[1], (Cout,), jnp.float32),
        "b1": 0.1 * jax.random.normal(ks[2], (Cout,), jnp.float32),
        "w2": jax.random.normal(ks[3], (3, 3, Cout, Cout), jnp.float32)
              * (1.0 / jnp.sqrt(9.0 * Cout)),
        "g2": 1.0 + 0.1 * jax.random.normal(ks[4], (Cout,), jnp.float32),
        "b2": 0.1 * jax.random.normal(ks[5], (Cout,), jnp.float32),
        "wid": jax.random.normal(ks[6], (1, 1, Cin, Cout), jnp.float32)
               * (1.0 / jnp.sqrt(1.0 * Cin)),
        "gid": 1.0 + 0.1 * jax.random.normal(ks[7], (Cout,), jnp.float32),
        "bid": 0.1 * jax.random.normal(ks[8], (Cout,), jnp.float32),
    }
    x = jax.random.normal(ks[9], (N, Cin, H, W), jnp.float32)

    # tile_h=8 -> 2 row tiles per image: exercises the gridded path, the halo
    # recompute, and the cross-tile BatchNorm statistic accumulation.
    out = jax.block_until_ready(resnet_block_forward(x, params, tile_h=8))
    ref = jax.block_until_ready(resnet_block_reference(x, params))

    assert out.shape == (N, Cout, H, W), out.shape
    max_err = float(jnp.max(jnp.abs(out - ref)))
    assert jnp.allclose(out, ref, atol=2e-3, rtol=2e-3), f"max_err={max_err}"
    print("KERNEL_OK")
</pallas_src>

<mosaic_0001>
module attributes {stable_mosaic.version = 11 : i64} {
  func.func @stats_kernel(%arg0: i32, %arg1: memref<1x12x20x4xf32, #tpu.memory_space<vmem>>, %arg2: memref<9x4x8xf32, #tpu.memory_space<vmem>>, %arg3: memref<4x8xf32, #tpu.memory_space<vmem>>, %arg4: memref<8x8xf32, #tpu.memory_space<vmem>>, %arg5: memref<8x8xf32, #tpu.memory_space<vmem>>) attributes {dimension_semantics = [#tpu.dimension_semantics<parallel>], iteration_bounds = array<i64: 4>, scalar_prefetch = 0 : i64, scratch_operands = 0 : i64, tpu.core_type = #tpu.core_type<tc>, window_params = [{transform_indices = @transform_0, window_bounds = array<i64: 1, 12, 20, 4>}, {pipeline_mode = #tpu.pipeline_mode<synchronous>, transform_indices = @transform_1, window_bounds = array<i64: 9, 4, 8>}, {pipeline_mode = #tpu.pipeline_mode<synchronous>, transform_indices = @transform_2, window_bounds = array<i64: 4, 8>}, {transform_indices = @transform_3, window_bounds = array<i64: 8, 8>}, {transform_indices = @transform_4, window_bounds = array<i64: 8, 8>}]} {
    %c0 = arith.constant 0 : index
    %c0_0 = arith.constant 0 : index
    %c0_1 = arith.constant 0 : index
    %c0_2 = arith.constant 0 : index
    %0 = vector.load %arg1[%c0, %c0_0, %c0_1, %c0_2] : memref<1x12x20x4xf32, #tpu.memory_space<vmem>>, vector<1x12x20x4xf32>
    %1 = vector.shape_cast %0 : vector<1x12x20x4xf32> to vector<12x20x4xf32>
    %cst = arith.constant 0.000000e+00 : f32
    %2 = vector.broadcast %cst : f32 to vector<128x8xf32>
    %3 = vector.extract_strided_slice %1 {offsets = [1, 1, 0], sizes = [8, 16, 4], strides = [1, 1, 1]} : vector<12x20x4xf32> to vector<8x16x4xf32>
    %4 = vector.shape_cast %3 : vector<8x16x4xf32> to vector<128x4xf32>
    %c0_3 = arith.constant 0 : index
    %c0_4 = arith.constant 0 : index
    %c0_5 = arith.constant 0 : index
    %5 = vector.load %arg2[%c0_3, %c0_4, %c0_5] : memref<9x4x8xf32, #tpu.memory_space<vmem>>, vector<1x4x8xf32>
    %6 = vector.shape_cast %5 : vector<1x4x8xf32> to vector<4x8xf32>
    %cst_6 = arith.constant dense<0.000000e+00> : vector<128x8xf32>
    %7 = tpu.matmul %4, %6, %cst_6 {dimension_numbers = #tpu.dot_dimension_numbers<[1], [0], [0], [1], [0, 0, 1, 1], [], []>} : vector<128x4xf32>, vector<4x8xf32>, vector<128x8xf32> -> vector<128x8xf32>
    %8 = arith.addf %2, %7 : vector<128x8xf32>
    %9 = vector.extract_strided_slice %1 {offsets = [1, 2, 0], sizes = [8, 16, 4], strides = [1, 1, 1]} : vector<12x20x4xf32> to vector<8x16x4xf32>
    %10 = vector.shape_cast %9 : vector<8x16x4xf32> to vector<128x4xf32>
    %c1 = arith.constant 1 : index
    %c0_7 = arith.constant 0 : index
    %c0_8 = arith.constant 0 : index
    %11 = vector.load %arg2[%c1, %c0_7, %c0_8] : memref<9x4x8xf32, #tpu.memory_space<vmem>>, vector<1x4x8xf32>
    %12 = vector.shape_cast %11 : vector<1x4x8xf32> to vector<4x8xf32>
    %cst_9 = arith.constant dense<0.000000e+00> : vector<128x8xf32>
    %13 = tpu.matmul %10, %12, %cst_9 {dimension_numbers = #tpu.dot_dimension_numbers<[1], [0], [0], [1], [0, 0, 1, 1], [], []>} : vector<128x4xf32>, vector<4x8xf32>, vector<128x8xf32> -> vector<128x8xf32>
    %14 = arith.addf %8, %13 : vector<128x8xf32>
    %15 = vector.extract_strided_slice %1 {offsets = [1, 3, 0], sizes = [8, 16, 4], strides = [1, 1, 1]} : vector<12x20x4xf32> to vector<8x16x4xf32>
    %16 = vector.shape_cast %15 : vector<8x16x4xf32> to vector<128x4xf32>
    %c2 = arith.constant 2 : index
    %c0_10 = arith.constant 0 : index
    %c0_11 = arith.constant 0 : index
    %17 = vector.load %arg2[%c2, %c0_10, %c0_11] : memref<9x4x8xf32, #tpu.memory_space<vmem>>, vector<1x4x8xf32>
    %18 = vector.shape_cast %17 : vector<1x4x8xf32> to vector<4x8xf32>
    %cst_12 = arith.constant dense<0.000000e+00> : vector<128x8xf32>
    %19 = tpu.matmul %16, %18, %cst_12 {dimension_numbers = #tpu.dot_dimension_numbers<[1], [0], [0], [1], [0, 0, 1, 1], [], []>} : vector<128x4xf32>, vector<4x8xf32>, vector<128x8xf32> -> vector<128x8xf32>
    %20 = arith.addf %14, %19 : vector<128x8xf32>
    %21 = vector.extract_strided_slice %1 {offsets = [2, 1, 0], sizes = [8, 16, 4], strides = [1, 1, 1]} : vector<12x20x4xf32> to vector<8x16x4xf32>
    %22 = vector.shape_cast %21 : vector<8x16x4xf32> to vector<128x4xf32>
    %c3 = arith.constant 3 : index
    %c0_13 = arith.constant 0 : index
    %c0_14 = arith.constant 0 : index
    %23 = vector.load %arg2[%c3, %c0_13, %c0_14] : memref<9x4x8xf32, #tpu.memory_space<vmem>>, vector<1x4x8xf32>
    %24 = vector.shape_cast %23 : vector<1x4x8xf32> to vector<4x8xf32>
    %cst_15 = arith.constant dense<0.000000e+00> : vector<128x8xf32>
    %25 = tpu.matmul %22, %24, %cst_15 {dimension_numbers = #tpu.dot_dimension_numbers<[1], [0], [0], [1], [0, 0, 1, 1], [], []>} : vector<128x4xf32>, vector<4x8xf32>, vector<128x8xf32> -> vector<128x8xf32>
    %26 = arith.addf %20, %25 : vector<128x8xf32>
    %27 = vector.extract_strided_slice %1 {offsets = [2, 2, 0], sizes = [8, 16, 4], strides = [1, 1, 1]} : vector<12x20x4xf32> to vector<8x16x4xf32>
    %28 = vector.shape_cast %27 : vector<8x16x4xf32> to vector<128x4xf32>
    %c4 = arith.constant 4 : index
    %c0_16 = arith.constant 0 : index
    %c0_17 = arith.constant 0 : index
    %29 = vector.load %arg2[%c4, %c0_16, %c0_17] : memref<9x4x8xf32, #tpu.memory_space<vmem>>, vector<1x4x8xf32>
    %30 = vector.shape_cast %29 : vector<1x4x8xf32> to vector<4x8xf32>
    %cst_18 = arith.constant dense<0.000000e+00> : vector<128x8xf32>
    %31 = tpu.matmul %28, %30, %cst_18 {dimension_numbers = #tpu.dot_dimension_numbers<[1], [0], [0], [1], [0, 0, 1, 1], [], []>} : vector<128x4xf32>, vector<4x8xf32>, vector<128x8xf32> -> vector<128x8xf32>
    %32 = arith.addf %26, %31 : vector<128x8xf32>
    %33 = vector.extract_strided_slice %1 {offsets = [2, 3, 0], sizes = [8, 16, 4], strides = [1, 1, 1]} : vector<12x20x4xf32> to vector<8x16x4xf32>
    %34 = vector.shape_cast %33 : vector<8x16x4xf32> to vector<128x4xf32>
    %c5 = arith.constant 5 : index
    %c0_19 = arith.constant 0 : index
    %c0_20 = arith.constant 0 : index
    %35 = vector.load %arg2[%c5, %c0_19, %c0_20] : memref<9x4x8xf32, #tpu.memory_space<vmem>>, vector<1x4x8xf32>
    %36 = vector.shape_cast %35 : vector<1x4x8xf32> to vector<4x8xf32>
    %cst_21 = arith.constant dense<0.000000e+00> : vector<128x8xf32>
    %37 = tpu.matmul %34, %36, %cst_21 {dimension_numbers = #tpu.dot_dimension_numbers<[1], [0], [0], [1], [0, 0, 1, 1], [], []>} : vector<128x4xf32>, vector<4x8xf32>, vector<128x8xf32> -> vector<128x8xf32>
    %38 = arith.addf %32, %37 : vector<128x8xf32>
    %39 = vector.extract_strided_slice %1 {offsets = [3, 1, 0], sizes = [8, 16, 4], strides = [1, 1, 1]} : vector<12x20x4xf32> to vector<8x16x4xf32>
    %40 = vector.shape_cast %39 : vector<8x16x4xf32> to vector<128x4xf32>
    %c6 = arith.constant 6 : index
    %c0_22 = arith.constant 0 : index
    %c0_23 = arith.constant 0 : index
    %41 = vector.load %arg2[%c6, %c0_22, %c0_23] : memref<9x4x8xf32, #tpu.memory_space<vmem>>, vector<1x4x8xf32>
    %42 = vector.shape_cast %41 : vector<1x4x8xf32> to vector<4x8xf32>
    %cst_24 = arith.constant dense<0.000000e+00> : vector<128x8xf32>
    %43 = tpu.matmul %40, %42, %cst_24 {dimension_numbers = #tpu.dot_dimension_numbers<[1], [0], [0], [1], [0, 0, 1, 1], [], []>} : vector<128x4xf32>, vector<4x8xf32>, vector<128x8xf32> -> vector<128x8xf32>
    %44 = arith.addf %38, %43 : vector<128x8xf32>
    %45 = vector.extract_strided_slice %1 {offsets = [3, 2, 0], sizes = [8, 16, 4], strides = [1, 1, 1]} : vector<12x20x4xf32> to vector<8x16x4xf32>
    %46 = vector.shape_cast %45 : vector<8x16x4xf32> to vector<128x4xf32>
    %c7 = arith.constant 7 : index
    %c0_25 = arith.constant 0 : index
    %c0_26 = arith.constant 0 : index
    %47 = vector.load %arg2[%c7, %c0_25, %c0_26] : memref<9x4x8xf32, #tpu.memory_space<vmem>>, vector<1x4x8xf32>
    %48 = vector.shape_cast %47 : vector<1x4x8xf32> to vector<4x8xf32>
    %cst_27 = arith.constant dense<0.000000e+00> : vector<128x8xf32>
    %49 = tpu.matmul %46, %48, %cst_27 {dimension_numbers = #tpu.dot_dimension_numbers<[1], [0], [0], [1], [0, 0, 1, 1], [], []>} : vector<128x4xf32>, vector<4x8xf32>, vector<128x8xf32> -> vector<128x8xf32>
    %50 = arith.addf %44, %49 : vector<128x8xf32>
    %51 = vector.extract_strided_slice %1 {offsets = [3, 3, 0], sizes = [8, 16, 4], strides = [1, 1, 1]} : vector<12x20x4xf32> to vector<8x16x4xf32>
    %52 = vector.shape_cast %51 : vector<8x16x4xf32> to vector<128x4xf32>
    %c8 = arith.constant 8 : index
    %c0_28 = arith.constant 0 : index
    %c0_29 = arith.constant 0 : index
    %53 = vector.load %arg2[%c8, %c0_28, %c0_29] : memref<9x4x8xf32, #tpu.memory_space<vmem>>, vector<1x4x8xf32>
    %54 = vector.shape_cast %53 : vector<1x4x8xf32> to vector<4x8xf32>
    %cst_30 = arith.constant dense<0.000000e+00> : vector<128x8xf32>
    %55 = tpu.matmul %52, %54, %cst_30 {dimension_numbers = #tpu.dot_dimension_numbers<[1], [0], [0], [1], [0, 0, 1, 1], [], []>} : vector<128x4xf32>, vector<4x8xf32>, vector<128x8xf32> -> vector<128x8xf32>
    %56 = arith.addf %50, %55 : vector<128x8xf32>
    %cst_31 = arith.constant 0.000000e+00 : f32
    %57 = vector.broadcast %cst_31 : f32 to vector<8x8xf32>
    %c0_32 = arith.constant 0 : index
    %c0_33 = arith.constant 0 : index
    %58 = vector.load %arg4[%c0_32, %c0_33] : memref<8x8xf32, #tpu.memory_space<vmem>>, vector<8x8xf32>
    tpu.vector_store %arg4[%c0_32, %c0_33], %57 {strides = array<i32>} : memref<8x8xf32, #tpu.memory_space<vmem>>, vector<8x8xf32>,
    %cst_34 = arith.constant dense<0.000000e+00> : vector<8xf32>
    %59 = vector.multi_reduction <add>, %56, %cst_34 [0] : vector<128x8xf32> to vector<8xf32>
    %60 = vector.shape_cast %59 : vector<8xf32> to vector<1x8xf32>
    %c0_35 = arith.constant 0 : index
    %c0_36 = arith.constant 0 : index
    %61 = vector.load %arg4[%c0_35, %c0_36] : memref<8x8xf32, #tpu.memory_space<vmem>>, vector<1x8xf32>
    tpu.vector_store %arg4[%c0_35, %c0_36], %60 {strides = array<i32>} : memref<8x8xf32, #tpu.memory_space<vmem>>, vector<1x8xf32>,
    %62 = arith.mulf %56, %56 : vector<128x8xf32>
    %cst_37 = arith.constant dense<0.000000e+00> : vector<8xf32>
    %63 = vector.multi_reduction <add>, %62, %cst_37 [0] : vector<128x8xf32> to vector<8xf32>
    %64 = vector.shape_cast %63 : vector<8xf32> to vector<1x8xf32>
    %c1_38 = arith.constant 1 : index
    %c0_39 = arith.constant 0 : index
    %65 = vector.load %arg4[%c1_38, %c0_39] : memref<8x8xf32, #tpu.memory_space<vmem>>, vector<1x8xf32>
    tpu.vector_store %arg4[%c1_38, %c0_39], %64 {strides = array<i32>} : memref<8x8xf32, #tpu.memory_space<vmem>>, vector<1x8xf32>,
    %66 = vector.extract_strided_slice %1 {offsets = [2, 2, 0], sizes = [8, 16, 4], strides = [1, 1, 1]} : vector<12x20x4xf32> to vector<8x16x4xf32>
    %67 = vector.shape_cast %66 : vector<8x16x4xf32> to vector<128x4xf32>
    %c0_40 = arith.constant 0 : index
    %c0_41 = arith.constant 0 : index
    %68 = vector.load %arg3[%c0_40, %c0_41] : memref<4x8xf32, #tpu.memory_space<vmem>>, vector<4x8xf32>
    %cst_42 = arith.constant dense<0.000000e+00> : vector<128x8xf32>
    %69 = tpu.matmul %67, %68, %cst_42 {dimension_numbers = #tpu.dot_dimension_numbers<[1], [0], [0], [1], [0, 0, 1, 1], [], []>} : vector<128x4xf32>, vector<4x8xf32>, vector<128x8xf32> -> vector<128x8xf32>
    %cst_43 = arith.constant 0.000000e+00 : f32
    %70 = vector.broadcast %cst_43 : f32 to vector<8x8xf32>
    %c0_44 = arith.constant 0 : index
    %c0_45 = arith.constant 0 : index
    %71 = vector.load %arg5[%c0_44, %c0_45] : memref<8x8xf32, #tpu.memory_space<vmem>>, vector<8x8xf32>
    tpu.vector_store %arg5[%c0_44, %c0_45], %70 {strides = array<i32>} : memref<8x8xf32, #tpu.memory_space<vmem>>, vector<8x8xf32>,
    %cst_46 = arith.constant dense<0.000000e+00> : vector<8xf32>
    %72 = vector.multi_reduction <add>, %69, %cst_46 [0] : vector<128x8xf32> to vector<8xf32>
    %73 = vector.shape_cast %72 : vector<8xf32> to vector<1x8xf32>
    %c0_47 = arith.constant 0 : index
    %c0_48 = arith.constant 0 : index
    %74 = vector.load %arg5[%c0_47, %c0_48] : memref<8x8xf32, #tpu.memory_space<vmem>>, vector<1x8xf32>
    tpu.vector_store %arg5[%c0_47, %c0_48], %73 {strides = array<i32>} : memref<8x8xf32, #tpu.memory_space<vmem>>, vector<1x8xf32>,
    %75 = arith.mulf %69, %69 : vector<128x8xf32>
    %cst_49 = arith.constant dense<0.000000e+00> : vector<8xf32>
    %76 = vector.multi_reduction <add>, %75, %cst_49 [0] : vector<128x8xf32> to vector<8xf32>
    %77 = vector.shape_cast %76 : vector<8xf32> to vector<1x8xf32>
    %c1_50 = arith.constant 1 : index
    %c0_51 = arith.constant 0 : index
    %78 = vector.load %arg5[%c1_50, %c0_51] : memref<8x8xf32, #tpu.memory_space<vmem>>, vector<1x8xf32>
    tpu.vector_store %arg5[%c1_50, %c0_51], %77 {strides = array<i32>} : memref<8x8xf32, #tpu.memory_space<vmem>>, vector<1x8xf32>,
    return
  }
  func.func @transform_0(%arg0: i32) -> (i32, i32, i32, i32) {
    %c0_i32 = arith.constant 0 : i32
    %c0_i32_0 = arith.constant 0 : i32
    %c0_i32_1 = arith.constant 0 : i32
    %c0_i32_2 = arith.constant 0 : i32
    return %arg0, %c0_i32, %c0_i32_0, %c0_i32_1 : i32, i32, i32, i32
  }
  func.func @transform_1(%arg0: i32) -> (i32, i32, i32) {
    %c0_i32 = arith.constant 0 : i32
    %c0_i32_0 = arith.constant 0 : i32
    %c0_i32_1 = arith.constant 0 : i32
    %c0_i32_2 = arith.constant 0 : i32
    return %c0_i32, %c0_i32_0, %c0_i32_1 : i32, i32, i32
  }
  func.func @transform_2(%arg0: i32) -> (i32, i32) {
    %c0_i32 = arith.constant 0 : i32
    %c0_i32_0 = arith.constant 0 : i32
    %c0_i32_1 = arith.constant 0 : i32
    return %c0_i32, %c0_i32_0 : i32, i32
  }
  func.func @transform_3(%arg0: i32) -> (i32, i32) {
    %c0_i32 = arith.constant 0 : i32
    %c0_i32_0 = arith.constant 0 : i32
    return %arg0, %c0_i32 : i32, i32
  }
  func.func @transform_4(%arg0: i32) -> (i32, i32) {
    %c0_i32 = arith.constant 0 : i32
    %c0_i32_0 = arith.constant 0 : i32
    return %arg0, %c0_i32 : i32, i32
  }
}

</mosaic_0001>

<bundles_post_ra>
// kernel: tpu_custom_call.1
= control target key start
LH: loop header
LB: loop body
LE: loop exit
PB: predicated region body
PF: predicated region fallthrough
CT: control target
= control target key end

     0   :  { %s3214_s15 = smov 0   ;;  %s4062_s0 = inlined_call_operand.vmem [shape: f32[4,12,20,4], index: 0, kind: input, shape index: {}]   ;;  %s4063_s1 = inlined_call_operand.vmem [shape: f32[9,4,8], index: 1, kind: input, shape index: {}]   ;;  %s4064_s2 = inlined_call_operand.vmem [shape: f32[4,8], index: 2, kind: input, shape index: {}]   ;;  %s4065_s3 = inlined_call_operand.vmem [shape: f32[32,8], index: 3, kind: output, shape index: {0}]   ;;  %s4066_s4 = inlined_call_operand.vmem [shape: f32[32,8], index: 4, kind: output, shape index: {1}]  }
   0x1 LB: > { %s2424_s16 = sadd.s32 4294967295, %s3186_s15   ;;  %p2428_p0 = scmp.ge.s32.totalorder %s3186_s15, 1  ;;  %s3186_s15 = sphi %s3214_s15, %s15_s15  }
   0x2   : > { %p165_p1 = scmp.lt.s32.totalorder %s3186_s15, 5 }
   0x4   : > { %p166_p2 = pnand %p2428_p0, %p165_p1 }
   0x6   : > { %169 = sbr.rel (%p166_p2) target bundleno = 424 (0x1a8), region = 32 }
   0xd   : > { %vm379_vm0 = vcmask 1043456   ;;  %v2503_v0 = vld [vmem:[%s4063_s1 + $0x10] sm:$0xf]  ;;  %v2432_v1 = vld [vmem:[%s4063_s1 + $0x4] sm:$0xf]  ;;  %p194_p3 = scmp.lt.s32.totalorder %s2424_s16, 3 }
   0xe   : > { %2886 = vmatprep.subr.msk.mxu0 %vm379_vm0, %v2503_v0  ;;  %2782 = vmatprep.subr.msk.mxu1 %vm379_vm0, %v2432_v1  ;;  %v2521_v2 = vld [vmem:[%s4063_s1 + $0x14] sm:$0xf]  ;;  %v302_v3 = vld [vmem:[%s4063_s1] sm:$0xf]  ;;  %vm303_vm1 = vcmask 1045504   ;;  %vm346_vm2 = vcmask 31744  }
   0xf   : > { %2887 = vmatpush3.msk.msra.mxu0 %vm379_vm0, %v2503_v0  ;;  %2783 = vmatpush3.msk.msra.mxu1 %vm379_vm0, %v2432_v1  ;;  %s4088_s16 = smov (!%p194_p3, %s2424_s16), 3  ;;  %v3285_v20 = vld [vmem:[%s4063_s1 + $0x18] sm:$0xf]  ;;  %v3327_v35 = vld [vmem:[%s4063_s1 + $0x8] sm:$0xf]  ;;  %vm261_vm3 = vcmask 1046528  }
  0x10   : > { %2912 = vmatprep.subr.msk.mxu0 %vm379_vm0, %v2521_v2  ;;  %2808 = vmatprep.subr.msk.mxu1 %vm379_vm0, %v302_v3  ;;  %s3170_s25 = smul.u32 288, %s4088_s16  ;;  %vm708_vm4 = vcmask 1044480   ;;  %s2430_s17 = sshll.u32 %s4088_s16, 3  ;;  %vm2003_vm5 = vcmask 64512   ;;  %vm2042_vm6 = vcmask 57344  }
  0x11   : > { %s3950_s20 = scalar_lea.vmem %s4065_s3, %s2430_s17  ;;  %s3957_s23 = scalar_lea.vmem %s4066_s4, %s2430_s17 }
  0x12   : > { %s3246_s28 = scalar_lea.vmem %s4062_s0, %s3170_s25 }
  0x13   : > { %v3249_v4 = vld [vmem:[%s3246_s28 + $0x18] sm:$0xff]  ;;  %v3252_v5 = vld [vmem:[%s3246_s28 + $0x20] sm:$0xff]  ;;  %v3255_v6 = vld [vmem:[%s3246_s28 + $0x30] sm:$0xff] }
  0x14   : > { %v304_v7 = vrot.slane %v3249_v4, 2  ;;  %v305_v8 = vrot.slane %v3252_v5, 2  ;;  %v3260_v9 = vld [vmem:[%s3246_s28 + $0x38] sm:$0xff]  ;;  %v309_v10 = vrot.slane %v3255_v6, 2  ;;  %v3264_v11 = vld [vmem:[%s3246_s28 + $0x28] sm:$0xf] }
  0x15   : > { %v310_v12 = vrot.slane %v3260_v9, 2  ;;  %v307_v13 = vrot.slane %v3264_v11, 2  ;;  %v3269_v14 = vld [vmem:[%s3246_s28 + $0x40] sm:$0xf]  ;;  %v3274_v17 = vld [vmem:[%s3246_s28 + $0x48] sm:$0xff]  ;;  %v3277_v18 = vld [vmem:[%s3246_s28 + $0x50] sm:$0xff] }
  0x16   : > { %v306_v15 = vsel %vm303_vm1, %v304_v7, %v305_v8  ;;  %v312_v16 = vrot.slane %v3269_v14, 2  ;;  %v3280_v19 = vld [vmem:[%s3246_s28 + $0x58] sm:$0xf]  ;;  %v314_v23 = vrot.slane %v3274_v17, 2  ;;  %v315_v24 = vrot.slane %v3277_v18, 2  ;;  %v3295_v25 = vld [vmem:[%s3246_s28 + $0x60] sm:$0xff] }
  0x17   : > { %2784 = vmatprep.mubr.msk.f32.mxu1 %vm346_vm2, %v306_v15  ;;  %v3289_v21 = vsel %vm303_vm1, %v309_v10, %v310_v12  ;;  %v308_v22 = vsel %vm303_vm1, %v305_v8, %v307_v13  ;;  %v3298_v26 = vld [vmem:[%s3246_s28 + $0x68] sm:$0xff]  ;;  %v3301_v27 = vld [vmem:[%s3246_s28 + $0x70] sm:$0xf]  ;;  %v317_v29 = vrot.slane %v3280_v19, 2  ;;  %v319_v30 = vrot.slane %v3295_v25, 2  ;;  %v3313_v32 = vld [vmem:[%s3246_s28 + $0x78] sm:$0xff] }
  0x18   : > { %4072 = vst [vmem:[#allocation2_spill] sm:$0xff] %v3289_v21  ;;  %2888 = vmatprep.mubr.msk.f32.mxu0 %vm346_vm2, %v3289_v21  ;;  %2785 = vmatmul.mubr.msk.f32.vlgmr.msra.gmra.mrb[0].mxu1 %vm346_vm2, %v308_v22  ;;  %v3307_v28 = vsel %vm303_vm1, %v310_v12, %v312_v16  ;;  %v320_v31 = vrot.slane %v3298_v26, 2  ;;  %v3316_v33 = vld [vmem:[%s3246_s28 + $0x80] sm:$0xff]  ;;  %v3322_v34 = vsel %vm303_vm1, %v314_v23, %v315_v24  ;;  %v322_v37 = vrot.slane %v3301_v27, 2  ;;  %v3344_v41 = vld [vmem:[%s3246_s28 + $0x88] sm:$0xf] }
  0x19   : > { %4073 = vst [vmem:[#allocation3_spill] sm:$0xff] %v3307_v28  ;;  %2889 = vmatmul.mubr.msk.f32.vlgmr.msra.gmra.mrb[0].mxu0 %vm346_vm2, %v3307_v28  ;;  %2809 = vmatpush3.msk.msra.mxu1 %vm379_vm0, %v302_v3  ;;  %v3333_v36 = vsel %vm303_vm1, %v315_v24, %v317_v29  ;;  %v324_v39 = vrot.slane %v3313_v32, 2  ;;  %v325_v40 = vrot.slane %v3316_v33, 2  ;;  %v3351_v42 = vld [vmem:[%s3246_s28 + $0x90] sm:$0xff]  ;;  %v3354_v43 = vld [vmem:[%s3246_s28 + $0x98] sm:$0xff]  ;;  %v327_v45 = vrot.slane %v3344_v41, 2 }
  0x1a   : > { %2913 = vmatpush3.msk.msra.mxu0 %vm379_vm0, %v2521_v2  ;;  %2787 = vmatprep.mubr.msk.f32.mxu1 %vm346_vm2, %v3289_v21  ;;  %v3339_v38 = vsel %vm303_vm1, %v319_v30, %v320_v31  ;;  %v3365_v44 = vsel %vm303_vm1, %v320_v31, %v322_v37  ;;  %v329_v47 = vrot.slane %v3351_v42, 2  ;;  %v330_v48 = vrot.slane %v3354_v43, 2  ;;  %v3374_v49 = vld [vmem:[%s3246_s28 + $0xa0] sm:$0xf]  ;;  %v3379_v50 = vld [vmem:[%s3246_s28 + $0xa8] sm:$0xff]  ;;  %v3382_v51 = vld [vmem:[%s3246_s28 + $0xb0] sm:$0xff] }
  0x1b   : > { %2891 = vmatprep.mubr.msk.f32.mxu0 %vm346_vm2, %v3322_v34  ;;  %2938 = vmatprep.subr.msk.mxu0 %vm379_vm0, %v3285_v20  ;;  %v3369_v46 = vsel %vm303_vm1, %v324_v39, %v325_v40  ;;  %v3391_v52 = vsel %vm303_vm1, %v325_v40, %v327_v45  ;;  %v332_v53 = vrot.slane %v3374_v49, 2  ;;  %v334_v55 = vrot.slane %v3379_v50, 2  ;;  %v3400_v57 = vld [vmem:[%s3246_s28 + $0xb8] sm:$0xf]  ;;  %v3405_v58 = vld [vmem:[%s3246_s28 + $0xc0] sm:$0xff]  ;;  %v3408_v59 = vld [vmem:[%s3246_s28 + $0xc8] sm:$0xff] }
  0x1c   : > { %2788 = vmatmul.mubr.msk.f32.gmra.mrb[2].mxu1 %vm346_vm2, %v3307_v28  ;;  %2834 = vmatprep.subr.msk.mxu1 %vm379_vm0, %v3327_v35  ;;  %v3395_v54 = vsel %vm303_vm1, %v329_v47, %v330_v48  ;;  %v335_v56 = vrot.slane %v3382_v51, 2  ;;  %v337_v61 = vrot.slane %v3400_v57, 2  ;;  %v339_v63 = vrot.slane %v3405_v58, 2  ;;  %v3426_v1 = vld [vmem:[%s3246_s28 + $0xd0] sm:$0xf]  ;;  %v3431_v2 = vld [vmem:[%s3246_s28 + $0xd8] sm:$0xff] }
  0x1d   : > { %2892 = vmatmul.mubr.msk.f32.gmra.mrb[2].mxu0 %vm346_vm2, %v3333_v36  ;;  %2790 = vmatprep.mubr.msk.f32.mxu1 %vm346_vm2, %v3322_v34  ;;  %v3417_v60 = vsel %vm303_vm1, %v330_v48, %v332_v53  ;;  %v340_v0 = vrot.slane %v3408_v59, 2  ;;  %v3434_v3 = vld [vmem:[%s3246_s28 + $0xe0] sm:$0xff]  ;;  %v342_v8 = vrot.slane %v3426_v1, 2  ;;  %v1125_v12 = vrot.slane %v3431_v2, 2  ;;  %v3452_v15 = vld [vmem:[%s3246_s28 + $0xe8] sm:$0xf] }
  0x1e   : > { %2894 = vmatprep.mubr.msk.f32.mxu0 %vm346_vm2, %v3339_v38  ;;  %v3421_v62 = vsel %vm303_vm1, %v334_v55, %v335_v56  ;;  %v3443_v7 = vsel %vm303_vm1, %v335_v56, %v337_v61  ;;  %v1126_v13 = vrot.slane %v3434_v3, 2  ;;  %v1128_v22 = vrot.slane %v3452_v15, 2  ;;  %v3497_v61 = vld [vmem:[%s3246_s28 + $0xf8] sm:$0xff] }
  0x1f   : > { %v3447_v10 = vsel %vm303_vm1, %v339_v63, %v340_v0  ;;  %v3463_v16 = vsel %vm303_vm1, %v340_v0, %v342_v8  ;;  %v262_v23 = vrot.slane %v3249_v4, 1  ;;  %v263_v24 = vrot.slane %v3252_v5, 1  ;;  %v236_v63 = vld [vmem:[%s3246_s28 + $0x100] sm:$0xf] }
  0x20   : > { %2791 = vmatmul.mubr.msk.f32.gmra.mrb[4].mxu1 %vm346_vm2, %v3333_v36  ;;  %v265_v29 = vrot.slane %v3264_v11, 1  ;;  %v3470_v30 = vsel %vm303_vm1, %v1125_v12, %v1126_v13  ;;  %v714_v31 = vrot.slane %v3255_v6, 3  ;;  %v715_v37 = vrot.slane %v3260_v9, 3 }
  0x21   : > { %2895 = vmatmul.mubr.msk.f32.gmra.mrb[4].mxu0 %vm346_vm2, %v3365_v44  ;;  %2793 = vmatprep.mubr.msk.f32.mxu1 %vm346_vm2, %v3339_v38  ;;  %v717_v39 = vrot.slane %v3269_v14, 3  ;;  %v267_v40 = vrot.slane %v3255_v6, 1  ;;  %v268_v45 = vrot.slane %v3260_v9, 1  ;;  %v719_v47 = vrot.slane %v3274_v17, 3 }
  0x22   : > { %2897 = vmatprep.mubr.msk.f32.mxu0 %vm346_vm2, %v3369_v46  ;;  %v720_v48 = vrot.slane %v3277_v18, 3  ;;  %v270_v53 = vrot.slane %v3269_v14, 1  ;;  %v3489_v55 = vsel %vm303_vm1, %v1126_v13, %v1128_v22  ;;  %v264_v6 = vsel %vm261_vm3, %v262_v23, %v263_v24 }
  0x23   : > { %4074 = vst [vmem:[#allocation4_spill] sm:$0xff] %v3489_v55  ;;  %v3493_v9 = vsel %vm708_vm4, %v714_v31, %v715_v37  ;;  %v266_v56 = vsel %vm261_vm3, %v263_v24, %v265_v29  ;;  %v3503_v14 = vsel %vm708_vm4, %v715_v37, %v717_v39  ;;  %v3506_v0 = vsel %vm261_vm3, %v267_v40, %v268_v45  ;;  %v3522_v29 = vld [vmem:[%s3246_s28 + $0xf0] sm:$0xff] }
  0x24   : > { %2794 = vmatmul.mubr.msk.f32.gmra.mrb[6].mxu1 %vm346_vm2, %v3365_v44  ;;  %v722_v8 = vrot.slane %v3280_v19, 3  ;;  %v272_v12 = vrot.slane %v3274_v17, 1  ;;  %v3514_v13 = vsel %vm708_vm4, %v719_v47, %v720_v48  ;;  %v3517_v22 = vsel %vm261_vm3, %v268_v45, %v270_v53 }
  0x25   : > { %2898 = vmatmul.mubr.msk.f32.gmra.mrb[6].mxu0 %vm346_vm2, %v3391_v52  ;;  %2796 = vmatprep.mubr.msk.f32.mxu1 %vm346_vm2, %v3369_v46  ;;  %v273_v23 = vrot.slane %v3277_v18, 1  ;;  %v724_v24 = vrot.slane %v3295_v25, 3  ;;  %v725_v17 = vrot.slane %v3298_v26, 3  ;;  %v4069_v31 = vrot.slane %v3497_v61, 1 }
  0x26   : > { %2900 = vmatprep.mubr.msk.f32.mxu0 %vm346_vm2, %v3395_v54  ;;  %v1481_v37 = vrot.slane %v236_v63, 1  ;;  %v1653_v39 = vrot.slane %v3522_v29, 2  ;;  %v275_v40 = vrot.slane %v3280_v19, 1  ;;  %v1654_v45 = vrot.slane %v3497_v61, 2 }
  0x27   : > { %v1656_v47 = vrot.slane %v236_v63, 2  ;;  %v1828_v18 = vrot.slane %v3522_v29, 3  ;;  %v3534_v53 = vsel %vm708_vm4, %v720_v48, %v722_v8  ;;  %v1829_v19 = vrot.slane %v3497_v61, 3  ;;  %v3558_v8 = vld [vmem:[%s4063_s1 + $0xc] sm:$0xf] }
  0x28   : > { %2797 = vmatmul.mubr.msk.f32.gmra.mrb[8].mxu1 %vm346_vm2, %v3391_v52  ;;  %v3544_v28 = vsel %vm261_vm3, %v4069_v31, %v1481_v37  ;;  %v1831_v21 = vrot.slane %v236_v63, 3  ;;  %v3552_v48 = vsel %vm261_vm3, %v272_v12, %v273_v23  ;;  %v3561_v37 = vsel %vm303_vm1, %v1653_v39, %v1654_v45 }
  0x29   : > { %2901 = vmatmul.mubr.msk.f32.gmra.mrb[8].mxu0 %vm346_vm2, %v3417_v60  ;;  %2799 = vmatprep.mubr.msk.f32.mxu1 %vm346_vm2, %v3395_v54  ;;  %4075 = vst [vmem:[#allocation5_spill] sm:$0xff] %v3561_v37  ;;  %v3564_v63 = vsel %vm303_vm1, %v1654_v45, %v1656_v47  ;;  %v278_v12 = vrot.slane %v3298_v26, 1  ;;  %v3573_v31 = vsel %vm708_vm4, %v1828_v18, %v1829_v19  ;;  %v730_v45 = vrot.slane %v3316_v33, 3 }
  0x2a   : > { %2903 = vmatprep.mubr.msk.f32.mxu0 %vm346_vm2, %v3421_v62  ;;  %4076 = vst [vmem:[#allocation6_spill] sm:$0xff] %v3564_v63  ;;  %4077 = vst [vmem:[#allocation7_spill] sm:$0xff] %v3573_v31  ;;  %v3581_v39 = vsel %vm708_vm4, %v724_v24, %v725_v17  ;;  %v280_v26 = vrot.slane %v3301_v27, 1  ;;  %v732_v47 = vrot.slane %v3344_v41, 3  ;;  %v282_v18 = vrot.slane %v3313_v32, 1 }
  0x2b   : > { %v293_v31 = vrot.slane %v3382_v51, 1  ;;  %v298_v63 = vrot.slane %v3408_v59, 1  ;;  %v710_v37 = vrot.slane %v3252_v5, 3 }
  0x2c   : > { %2800 = vmatmul.mubr.msk.f32.gmra.mrb[10].mxu1 %vm346_vm2, %v3417_v60 }
  0x2d   : > { %2904 = vmatmul.mubr.msk.f32.gmra.mrb[10].mxu0 %vm346_vm2, %v3443_v7  ;;  %2802 = vmatprep.mubr.msk.f32.mxu1 %vm346_vm2, %v3421_v62 }
  0x2e   : > { %2906 = vmatprep.mubr.msk.f32.mxu0 %vm346_vm2, %v3447_v10 }
  0x30   : > { %2803 = vmatmul.mubr.msk.f32.gmra.mrb[12].mxu1 %vm346_vm2, %v3443_v7 }
  0x31   : > { %2907 = vmatmul.mubr.msk.f32.gmra.mrb[12].mxu0 %vm346_vm2, %v3463_v16  ;;  %2805 = vmatprep.mubr.msk.f32.mxu1 %vm346_vm2, %v3447_v10 }
  0x32   : > { %2909 = vmatprep.mubr.msk.f32.mxu0 %vm346_vm2, %v3470_v30 }
  0x34   : > { %2806 = vmatmul.mubr.msk.f32.gmra.mrb[14].mxu1 %vm346_vm2, %v3463_v16 }
  0x35   : > { %2910 = vmatmul.mubr.msk.f32.gmra.mrb[14].mxu0 %vm346_vm2, %v3489_v55  ;;  %2810 = vmatprep.mubr.msk.f32.mxu1 %vm346_vm2, %v264_v6  ;;  %v3539_v6 = vld [vmem:[%s4063_s1 + $0x1c] sm:$0xf]  ;;  %v3576_v55 = vsel %vm708_vm4, %v1829_v19, %v1831_v21  ;;  %v3596_v21 = vsel %vm261_vm3, %v273_v23, %v275_v40  ;;  %v283_v19 = vrot.slane %v3316_v33, 1  ;;  %v735_v40 = vrot.slane %v3354_v43, 3 }
  0x36   : > { %2914 = vmatprep.mubr.msk.f32.mxu0 %vm346_vm2, %v3493_v9  ;;  %4078 = vst [vmem:[#allocation8_spill] sm:$0xff] %v3576_v55  ;;  %v737_v33 = vrot.slane %v3374_v49, 3  ;;  %v288_v55 = vrot.slane %v3354_v43, 1 }
  0x38   : > { %2811 = vmatmul.mubr.msk.f32.vlgmr.msra.gmra.mrb[0].mxu1 %vm346_vm2, %v266_v56  ;;  %v727_v56 = vrot.slane %v3301_v27, 3  ;;  %v3622_v27 = vsel %vm261_vm3, %v278_v12, %v280_v26  ;;  %v740_v26 = vrot.slane %v3382_v51, 3  ;;  %v3651_v43 = vsel %vm708_vm4, %v735_v40, %v737_v33 }
  0x39   : > { %2915 = vmatmul.mubr.msk.f32.vlgmr.msra.gmra.mrb[0].mxu0 %vm346_vm2, %v3503_v14  ;;  %2835 = vmatpush3.msk.msra.mxu1 %vm379_vm0, %v3327_v35  ;;  %v277_v35 = vrot.slane %v3295_v25, 1  ;;  %v747_v51 = vrot.slane %v3426_v1, 3 }
  0x3a   : > { %2939 = vmatpush3.msk.msra.mxu0 %vm379_vm0, %v3285_v20  ;;  %2813 = vmatprep.mubr.msk.f32.mxu1 %vm346_vm2, %v3506_v0  ;;  %v729_v20 = vrot.slane %v3313_v32, 3  ;;  %v3599_v25 = vsel %vm708_vm4, %v725_v17, %v727_v56  ;;  %v734_v17 = vrot.slane %v3351_v42, 3  ;;  %v285_v32 = vrot.slane %v3344_v41, 1 }
  0x3b   : > { %2917 = vmatprep.mubr.msk.f32.mxu0 %vm346_vm2, %v3514_v13  ;;  %2964 = vmatprep.subr.msk.mxu0 %vm379_vm0, %v3539_v6  ;;  %v3605_v24 = vsel %vm261_vm3, %v277_v35, %v278_v12  ;;  %v3629_v56 = vsel %vm708_vm4, %v730_v45, %v732_v47  ;;  %v3632_v35 = vsel %vm261_vm3, %v282_v18, %v283_v19  ;;  %v739_v41 = vrot.slane %v3379_v50, 3 }
  0x3c   : > { %2814 = vmatmul.mubr.msk.f32.gmra.mrb[2].mxu1 %vm346_vm2, %v3517_v22  ;;  %2860 = vmatprep.subr.msk.mxu1 %vm379_vm0, %v3558_v8  ;;  %v3611_v23 = vsel %vm708_vm4, %v729_v20, %v730_v45  ;;  %v287_v20 = vrot.slane %v3351_v42, 1  ;;  %v3637_v12 = vsel %vm708_vm4, %v734_v17, %v735_v40  ;;  %v3648_v42 = vsel %vm261_vm3, %v283_v19, %v285_v32 }
  0x3d   : > { %2918 = vmatmul.mubr.msk.f32.gmra.mrb[2].mxu0 %vm346_vm2, %v3534_v53  ;;  %2816 = vmatprep.mubr.msk.f32.mxu1 %vm346_vm2, %v3552_v48  ;;  %v290_v45 = vrot.slane %v3374_v49, 1  ;;  %v742_v18 = vrot.slane %v3400_v57, 3  ;;  %v292_v17 = vrot.slane %v3379_v50, 1  ;;  %v3663_v19 = vsel %vm708_vm4, %v739_v41, %v740_v26 }
  0x3e   : > { %2920 = vmatprep.mubr.msk.f32.mxu0 %vm346_vm2, %v3581_v39  ;;  %v3657_v47 = vsel %vm261_vm3, %v287_v20, %v288_v55  ;;  %v744_v40 = vrot.slane %v3405_v58, 3  ;;  %v745_v32 = vrot.slane %v3408_v59, 3  ;;  %v295_v50 = vrot.slane %v3400_v57, 1 }
  0x3f   : > { %v3674_v49 = vsel %vm261_vm3, %v288_v55, %v290_v45  ;;  %v3681_v33 = vsel %vm708_vm4, %v740_v26, %v742_v18  ;;  %v3684_v20 = vsel %vm261_vm3, %v292_v17, %v293_v31  ;;  %v297_v41 = vrot.slane %v3405_v58, 1 }
  0x40   : > { %2817 = vmatmul.mubr.msk.f32.gmra.mrb[4].mxu1 %vm346_vm2, %v3596_v21  ;;  %v3689_v55 = vsel %vm708_vm4, %v744_v40, %v745_v32  ;;  %v1300_v57 = vrot.slane %v3431_v2, 3  ;;  %v1301_v45 = vrot.slane %v3434_v3, 3  ;;  %v3700_v58 = vsel %vm261_vm3, %v293_v31, %v295_v50  ;;  %v2098_v50 = vld [vmem:[%s4064_s2] sm:$0xf] }
  0x41   : > { %2921 = vmatmul.mubr.msk.f32.gmra.mrb[4].mxu0 %vm346_vm2, %v3599_v25  ;;  %2819 = vmatprep.mubr.msk.f32.mxu1 %vm346_vm2, %v3605_v24  ;;  %v3703_v59 = vsel %vm708_vm4, %v745_v32, %v747_v51  ;;  %v300_v26 = vrot.slane %v3426_v1, 1  ;;  %v3709_v18 = vsel %vm261_vm3, %v297_v41, %v298_v63  ;;  %v1303_v17 = vrot.slane %v3452_v15, 3 }
  0x42   : > { %2923 = vmatprep.mubr.msk.f32.mxu0 %vm346_vm2, %v3611_v23  ;;  %v709_v40 = vrot.slane %v3249_v4, 3  ;;  %v3715_v31 = vsel %vm708_vm4, %v1300_v57, %v1301_v45  ;;  %v712_v1 = vrot.slane %v3264_v11, 3 }
  0x43   : > { %v3725_v32 = vsel %vm261_vm3, %v298_v63, %v300_v26  ;;  %v3730_v4 = vsel %vm708_vm4, %v1301_v45, %v1303_v17  ;;  %v2575_v63 = vld [vmem:[%s4063_s1 + $0x20] sm:$0xf] }
  0x44   : > { %2820 = vmatmul.mubr.msk.f32.gmra.mrb[6].mxu1 %vm346_vm2, %v3622_v27  ;;  %v711_v5 = vsel %vm708_vm4, %v709_v40, %v710_v37  ;;  %v713_v11 = vsel %vm708_vm4, %v710_v37, %v712_v1  ;;  %v4079_v37 = vrot.slane %v3497_v61, 1  ;;  %v4081_v61 = vld [vmem:[#allocation5_spill] sm:$0xff] }
  0x45   : > { %2924 = vmatmul.mubr.msk.f32.gmra.mrb[6].mxu0 %vm346_vm2, %v3629_v56  ;;  %2822 = vmatprep.mubr.msk.f32.mxu1 %vm346_vm2, %v3632_v35 }
  0x46   : > { %2926 = vmatprep.mubr.msk.f32.mxu0 %vm346_vm2, %v3637_v12 }
  0x48   : > { %2823 = vmatmul.mubr.msk.f32.gmra.mrb[8].mxu1 %vm346_vm2, %v3648_v42 }
  0x49   : > { %2927 = vmatmul.mubr.msk.f32.gmra.mrb[8].mxu0 %vm346_vm2, %v3651_v43  ;;  %2825 = vmatprep.mubr.msk.f32.mxu1 %vm346_vm2, %v3657_v47 }
  0x4a   : > { %2929 = vmatprep.mubr.msk.f32.mxu0 %vm346_vm2, %v3663_v19 }
  0x4c   : > { %2826 = vmatmul.mubr.msk.f32.gmra.mrb[10].mxu1 %vm346_vm2, %v3674_v49 }
  0x4d   : > { %2930 = vmatmul.mubr.msk.f32.gmra.mrb[10].mxu0 %vm346_vm2, %v3681_v33  ;;  %2828 = vmatprep.mubr.msk.f32.mxu1 %vm346_vm2, %v3684_v20 }
  0x4e   : > { %2932 = vmatprep.mubr.msk.f32.mxu0 %vm346_vm2, %v3689_v55 }
  0x50   : > { %2829 = vmatmul.mubr.msk.f32.gmra.mrb[12].mxu1 %vm346_vm2, %v3700_v58 }
  0x51   : > { %2933 = vmatmul.mubr.msk.f32.gmra.mrb[12].mxu0 %vm346_vm2, %v3703_v59  ;;  %2831 = vmatprep.mubr.msk.f32.mxu1 %vm346_vm2, %v3709_v18 }
  0x52   : > { %2935 = vmatprep.mubr.msk.f32.mxu0 %vm346_vm2, %v3715_v31 }
  0x54   : > { %2832 = vmatmul.mubr.msk.f32.gmra.mrb[14].mxu1 %vm346_vm2, %v3725_v32 }
  0x55   : > { %2936 = vmatmul.mubr.msk.f32.gmra.mrb[14].mxu0 %vm346_vm2, %v3730_v4  ;;  %2836 = vmatprep.mubr.msk.f32.mxu1 %vm346_vm2, %v711_v5 }
  0x56   : > { %2940 = vmatprep.mubr.msk.f32.mxu0 %vm346_vm2, %v3552_v48 }
  0x58   : > { %2837 = vmatmul.mubr.msk.f32.vlgmr.msra.gmra.mrb[0].mxu1 %vm346_vm2, %v713_v11 }
  0x59   : > { %2941 = vmatmul.mubr.msk.f32.vlgmr.msra.gmra.mrb[0].mxu0 %vm346_vm2, %v3596_v21  ;;  %2861 = vmatpush3.msk.msra.mxu1 %vm379_vm0, %v3558_v8 }
  0x5a   : > { %2965 = vmatpush3.msk.msra.mxu0 %vm379_vm0, %v3539_v6  ;;  %2839 = vmatprep.mubr.msk.f32.mxu1 %vm346_vm2, %v3493_v9  ;;  %v950_v9 = vrot.slane %v3431_v2, 1  ;;  %v953_v6 = vrot.slane %v3452_v15, 1  ;;  %v1478_v2 = vrot.slane %v3522_v29, 1  ;;  %v4084_v29 = vld [vmem:[#allocation3_spill] sm:$0xff] }
  0x5b   : > { %2943 = vmatprep.mubr.msk.f32.mxu0 %vm346_vm2, %v3605_v24  ;;  %2990 = vmatprep.subr.msk.mxu0 %vm379_vm0, %v2575_v63 }
  0x5c   : > { %2840 = vmatmul.mubr.msk.f32.gmra.mrb[2].mxu1 %vm346_vm2, %v3503_v14  ;;  %3016 = vmatprep.subr.msk.mxu1 %vm379_vm0, %v2098_v50  ;;  %v951_v14 = vrot.slane %v3434_v3, 1  ;;  %v1480_v15 = vsel %vm261_vm3, %v1478_v2, %v4079_v37 }
  0x5d   : > { %2944 = vmatmul.mubr.msk.f32.gmra.mrb[2].mxu0 %vm346_vm2, %v3622_v27  ;;  %2842 = vmatprep.mubr.msk.f32.mxu1 %vm346_vm2, %v3514_v13 }
  0x5e   : > { %2946 = vmatprep.mubr.msk.f32.mxu0 %vm346_vm2, %v3632_v35  ;;  %v952_v8 = vsel %vm261_vm3, %v950_v9, %v951_v14  ;;  %v954_v3 = vsel %vm261_vm3, %v951_v14, %v953_v6 }
  0x60   : > { %2843 = vmatmul.mubr.msk.f32.gmra.mrb[4].mxu1 %vm346_vm2, %v3534_v53 }
  0x61   : > { %2947 = vmatmul.mubr.msk.f32.gmra.mrb[4].mxu0 %vm346_vm2, %v3648_v42  ;;  %2845 = vmatprep.mubr.msk.f32.mxu1 %vm346_vm2, %v3581_v39 }
  0x62   : > { %2949 = vmatprep.mubr.msk.f32.mxu0 %vm346_vm2, %v3657_v47 }
  0x64   : > { %2846 = vmatmul.mubr.msk.f32.gmra.mrb[6].mxu1 %vm346_vm2, %v3599_v25 }
  0x65   : > { %2950 = vmatmul.mubr.msk.f32.gmra.mrb[6].mxu0 %vm346_vm2, %v3674_v49  ;;  %2848 = vmatprep.mubr.msk.f32.mxu1 %vm346_vm2, %v3611_v23 }
  0x66   : > { %2952 = vmatprep.mubr.msk.f32.mxu0 %vm346_vm2, %v3684_v20 }
  0x68   : > { %2849 = vmatmul.mubr.msk.f32.gmra.mrb[8].mxu1 %vm346_vm2, %v3629_v56 }
  0x69   : > { %2953 = vmatmul.mubr.msk.f32.gmra.mrb[8].mxu0 %vm346_vm2, %v3700_v58  ;;  %2851 = vmatprep.mubr.msk.f32.mxu1 %vm346_vm2, %v3637_v12 }
  0x6a   : > { %2955 = vmatprep.mubr.msk.f32.mxu0 %vm346_vm2, %v3709_v18 }
  0x6c   : > { %2852 = vmatmul.mubr.msk.f32.gmra.mrb[10].mxu1 %vm346_vm2, %v3651_v43 }
  0x6d   : > { %2956 = vmatmul.mubr.msk.f32.gmra.mrb[10].mxu0 %vm346_vm2, %v3725_v32  ;;  %2854 = vmatprep.mubr.msk.f32.mxu1 %vm346_vm2, %v3663_v19 }
  0x6e   : > { %2958 = vmatprep.mubr.msk.f32.mxu0 %vm346_vm2, %v952_v8 }
  0x70   : > { %2855 = vmatmul.mubr.msk.f32.gmra.mrb[12].mxu1 %vm346_vm2, %v3681_v33 }
  0x71   : > { %2959 = vmatmul.mubr.msk.f32.gmra.mrb[12].mxu0 %vm346_vm2, %v954_v3  ;;  %2857 = vmatprep.mubr.msk.f32.mxu1 %vm346_vm2, %v3689_v55 }
  0x72   : > { %2961 = vmatprep.mubr.msk.f32.mxu0 %vm346_vm2, %v1480_v15 }
  0x74   : > { %2858 = vmatmul.mubr.msk.f32.gmra.mrb[14].mxu1 %vm346_vm2, %v3703_v59 }
  0x75   : > { %2962 = vmatmul.mubr.msk.f32.gmra.mrb[14].mxu0 %vm346_vm2, %v3544_v28  ;;  %2862 = vmatprep.mubr.msk.f32.mxu1 %vm346_vm2, %v3506_v0  ;;  %v4080_v28 = vld [vmem:[#allocation4_spill] sm:$0xff]  ;;  %v4082_v0 = vld [vmem:[#allocation6_spill] sm:$0xff] }
  0x76   : > { %2966 = vmatprep.mubr.msk.f32.mxu0 %vm346_vm2, %v3322_v34 }
  0x78   : > { %2863 = vmatmul.mubr.msk.f32.vlgmr.msra.gmra.mrb[0].mxu1 %vm346_vm2, %v3517_v22  ;;  %v4083_v22 = vld [vmem:[#allocation2_spill] sm:$0xff] }
  0x79   : > { %2967 = vmatmul.mubr.msk.f32.vlgmr.msra.gmra.mrb[0].mxu0 %vm346_vm2, %v3333_v36  ;;  %3017 = vmatpush3.msk.msra.mxu1 %vm379_vm0, %v2098_v50 }
  0x7a   : > { %2991 = vmatpush3.msk.msra.mxu0 %vm379_vm0, %v2575_v63  ;;  %2865 = vmatprep.mubr.msk.f32.mxu1 %vm346_vm2, %v3552_v48 }
  0x7b   : > { %2969 = vmatprep.mubr.msk.f32.mxu0 %vm346_vm2, %v3339_v38 }
  0x7c   : > { %2866 = vmatmul.mubr.msk.f32.gmra.mrb[2].mxu1 %vm346_vm2, %v3596_v21 }
  0x7d   : > { %2970 = vmatmul.mubr.msk.f32.gmra.mrb[2].mxu0 %vm346_vm2, %v3365_v44  ;;  %2868 = vmatprep.mubr.msk.f32.mxu1 %vm346_vm2, %v3605_v24 }
  0x7e   : > { %2972 = vmatprep.mubr.msk.f32.mxu0 %vm346_vm2, %v3369_v46 }
  0x80   : > { %2869 = vmatmul.mubr.msk.f32.gmra.mrb[4].mxu1 %vm346_vm2, %v3622_v27 }
  0x81   : > { %2973 = vmatmul.mubr.msk.f32.gmra.mrb[4].mxu0 %vm346_vm2, %v3391_v52  ;;  %2871 = vmatprep.mubr.msk.f32.mxu1 %vm346_vm2, %v3632_v35 }
  0x82   : > { %2975 = vmatprep.mubr.msk.f32.mxu0 %vm346_vm2, %v3395_v54 }
  0x84   : > { %2872 = vmatmul.mubr.msk.f32.gmra.mrb[6].mxu1 %vm346_vm2, %v3648_v42 }
  0x85   : > { %2976 = vmatmul.mubr.msk.f32.gmra.mrb[6].mxu0 %vm346_vm2, %v3417_v60  ;;  %2874 = vmatprep.mubr.msk.f32.mxu1 %vm346_vm2, %v3657_v47 }
  0x86   : > { %2978 = vmatprep.mubr.msk.f32.mxu0 %vm346_vm2, %v3421_v62 }
  0x88   : > { %2875 = vmatmul.mubr.msk.f32.gmra.mrb[8].mxu1 %vm346_vm2, %v3674_v49 }
  0x89   : > { %2979 = vmatmul.mubr.msk.f32.gmra.mrb[8].mxu0 %vm346_vm2, %v3443_v7  ;;  %2877 = vmatprep.mubr.msk.f32.mxu1 %vm346_vm2, %v3684_v20 }
  0x8a   : > { %2981 = vmatprep.mubr.msk.f32.mxu0 %vm346_vm2, %v3447_v10 }
  0x8c   : > { %2878 = vmatmul.mubr.msk.f32.gmra.mrb[10].mxu1 %vm346_vm2, %v3700_v58 }
  0x8d   : > { %2982 = vmatmul.mubr.msk.f32.gmra.mrb[10].mxu0 %vm346_vm2, %v3463_v16  ;;  %2880 = vmatprep.mubr.msk.f32.mxu1 %vm346_vm2, %v3709_v18 }
  0x8e   : > { %2984 = vmatprep.mubr.msk.f32.mxu0 %vm346_vm2, %v3470_v30 }
  0x90   : > { %2881 = vmatmul.mubr.msk.f32.gmra.mrb[12].mxu1 %vm346_vm2, %v3725_v32 }
  0x91   : > { %2985 = vmatmul.mubr.msk.f32.gmra.mrb[12].mxu0 %vm346_vm2, %v4080_v28  ;;  %2883 = vmatprep.mubr.msk.f32.mxu1 %vm346_vm2, %v952_v8 }
  0x92   : > { %2987 = vmatprep.mubr.msk.f32.mxu0 %vm346_vm2, %v4081_v61 }
  0x94   : > { %2884 = vmatmul.mubr.msk.f32.gmra.mrb[14].mxu1 %vm346_vm2, %v954_v3 }
  0x95   : > { %2988 = vmatmul.mubr.msk.f32.gmra.mrb[14].mxu0 %vm346_vm2, %v4082_v0  ;;  %3018 = vmatprep.mubr.msk.f32.mxu1 %vm346_vm2, %v4083_v22 }
  0x96   : > { %2992 = vmatprep.mubr.msk.f32.mxu0 %vm346_vm2, %v3514_v13 }
  0x98   : > { %3019 = vmatmul.mubr.msk.f32.vlgmr.msra.gmra.mrb[16].mxu1 %vm346_vm2, %v4084_v29 }
  0x99   : > { %2993 = vmatmul.mubr.msk.f32.vlgmr.msra.gmra.mrb[0].mxu0 %vm346_vm2, %v3534_v53  ;;  %3021 = vmatprep.mubr.msk.f32.mxu1 %vm346_vm2, %v3322_v34  ;;  %v4085_v34 = vld [vmem:[#allocation7_spill] sm:$0xff] }
  0x9a   : > { %2995 = vmatprep.mubr.msk.f32.mxu0 %vm346_vm2, %v3581_v39 }
  0x9c   : > { %3022 = vmatmul.mubr.msk.f32.gmra.mrb[18].mxu1 %vm346_vm2, %v3333_v36  ;;  %v4086_v36 = vld [vmem:[#allocation8_spill] sm:$0xff] }
  0x9d   : > { %2996 = vmatmul.mubr.msk.f32.gmra.mrb[2].mxu0 %vm346_vm2, %v3599_v25  ;;  %3024 = vmatprep.mubr.msk.f32.mxu1 %vm346_vm2, %v3339_v38  ;;  %v3188_v38 = vmov 0.0  }
  0x9e   : > { %2998 = vmatprep.mubr.msk.f32.mxu0 %vm346_vm2, %v3611_v23  ;;  %2004 = vst.msk [vmem:[%s3950_s20] sm:$0xff] %vm2003_vm5, %v3188_v38  ;;  %2247 = vst.msk [vmem:[%s3957_s23] sm:$0xff] %vm2003_vm5, %v3188_v38 }
  0xa0   : > { %3025 = vmatmul.mubr.msk.f32.gmra.mrb[20].mxu1 %vm346_vm2, %v3365_v44 }
  0xa1   : > { %2999 = vmatmul.mubr.msk.f32.gmra.mrb[4].mxu0 %vm346_vm2, %v3629_v56  ;;  %3027 = vmatprep.mubr.msk.f32.mxu1 %vm346_vm2, %v3369_v46 }
  0xa2   : > { %3001 = vmatprep.mubr.msk.f32.mxu0 %vm346_vm2, %v3637_v12 }
  0xa4   : > { %3028 = vmatmul.mubr.msk.f32.gmra.mrb[22].mxu1 %vm346_vm2, %v3391_v52 }
  0xa5   : > { %3002 = vmatmul.mubr.msk.f32.gmra.mrb[6].mxu0 %vm346_vm2, %v3651_v43  ;;  %3030 = vmatprep.mubr.msk.f32.mxu1 %vm346_vm2, %v3395_v54 }
  0xa6   : > { %3004 = vmatprep.mubr.msk.f32.mxu0 %vm346_vm2, %v3663_v19 }
  0xa8   : > { %3031 = vmatmul.mubr.msk.f32.gmra.mrb[24].mxu1 %vm346_vm2, %v3417_v60 }
  0xa9   : > { %3005 = vmatmul.mubr.msk.f32.gmra.mrb[8].mxu0 %vm346_vm2, %v3681_v33  ;;  %3033 = vmatprep.mubr.msk.f32.mxu1 %vm346_vm2, %v3421_v62 }
  0xaa   : > { %3007 = vmatprep.mubr.msk.f32.mxu0 %vm346_vm2, %v3689_v55 }
  0xac   : > { %3034 = vmatmul.mubr.msk.f32.gmra.mrb[26].mxu1 %vm346_vm2, %v3443_v7 }
  0xad   : > { %3008 = vmatmul.mubr.msk.f32.gmra.mrb[10].mxu0 %vm346_vm2, %v3703_v59  ;;  %3036 = vmatprep.mubr.msk.f32.mxu1 %vm346_vm2, %v3447_v10 }
  0xae   : > { %3010 = vmatprep.mubr.msk.f32.mxu0 %vm346_vm2, %v3715_v31 }
  0xb0   : > { %3037 = vmatmul.mubr.msk.f32.gmra.mrb[28].mxu1 %vm346_vm2, %v3463_v16 }
  0xb1   : > { %3011 = vmatmul.mubr.msk.f32.gmra.mrb[12].mxu0 %vm346_vm2, %v3730_v4  ;;  %3039 = vmatprep.mubr.msk.f32.mxu1 %vm346_vm2, %v3470_v30 }
  0xb2   : > { %3013 = vmatprep.mubr.msk.f32.mxu0 %vm346_vm2, %v4085_v34 }
  0xb4   : > { %3040 = vmatmul.mubr.msk.f32.gmra.mrb[30].mxu1 %vm346_vm2, %v4080_v28 }
  0xb5   : > { %3014 = vmatmul.mubr.msk.f32.gmra.mrb[14].mxu0 %vm346_vm2, %v4086_v36 }
 0x14b   : > { %v2864_v44 = vpop.f32.mrb[0].mxu1 }
 0x14c   : > { %v1030_v46 = vpop.f32.mrb[1].mxu1 }
 0x14f   : > { %v2867_v52 = vpop.f32.mrb[2].mxu1 }
 0x150   : > { %v1040_v54 = vpop.f32.mrb[3].mxu1 }
 0x153   : > { %v2870_v60 = vpop.f32.mrb[4].mxu1 }
 0x154   : > { %v1050_v62 = vpop.f32.mrb[5].mxu1 }
 0x157   : > { %v3961_v7 = vpop.f32.mrb[6].mxu1 }
 0x158   : > { %v3963_v10 = vpop.f32.mrb[7].mxu1 }
 0x15b   : > { %v3965_v16 = vpop.f32.mrb[8].mxu1 }
 0x15c   : > { %v3967_v30 = vpop.f32.mrb[9].mxu1 }
 0x15f   : > { %v3969_v13 = vpop.f32.mrb[10].mxu1 }
 0x160   : > { %v3971_v53 = vpop.f32.mrb[11].mxu1 }
 0x163   : > { %v3973_v48 = vpop.f32.mrb[12].mxu1 }
 0x164   : > { %v3975_v39 = vpop.f32.mrb[13].mxu1 }
 0x167   : > { %v3977_v21 = vpop.f32.mrb[14].mxu1 }
 0x168   : > { %v3979_v25 = vpop.f32.mrb[15].mxu1 }
 0x16b   : > { %v3020_v24 = vpop.f32.mrb[16].mxu1 }
 0x16c   : > { %v2994_v23 = vpop.f32.mrb[0].mxu0  ;;  %v2249_v27 = vsel %vm2003_vm5, %v3020_v24, 0.0  ;;  %v2287_v56 = vmul.f32 %v3020_v24, %v3020_v24  ;;  %v2168_v35 = vpop.f32.mrb[17].mxu1 }
 0x16d   : > { %v3042_v12 = vadd.f32 %v2994_v23, %v2864_v44  ;;  %v1908_v42 = vpop.f32.mrb[1].mxu0  ;;  %v2248_v43 = vsel %vm2003_vm5, %v2168_v35, 0.0  ;;  %v2286_v47 = vmul.f32 %v2168_v35, %v2168_v35 }
 0x16e   : > { %v3043_v19 = vadd.f32 %v1908_v42, %v1030_v46  ;;  %v2303_v49 = vsel %vm2003_vm5, %v2287_v56, 0.0  ;;  %v2250_v51 = vadd.f32 %v2249_v27, %v2248_v43 }
 0x16f   : > { %v2006_v33 = vsel %vm2003_vm5, %v3042_v12, 0.0  ;;  %v2045_v20 = vmul.f32 %v3042_v12, %v3042_v12  ;;  %v2302_v41 = vsel %vm2003_vm5, %v2286_v47, 0.0  ;;  %v3023_v55 = vpop.f32.mrb[18].mxu1 }
 0x170   : > { %v2005_v57 = vsel %vm2003_vm5, %v3043_v19, 0.0  ;;  %v2044_v45 = vmul.f32 %v3043_v19, %v3043_v19  ;;  %v2304_v58 = vadd.f32 %v2303_v49, %v2302_v41  ;;  %v2997_v59 = vpop.f32.mrb[2].mxu0  ;;  %v2178_v26 = vpop.f32.mrb[19].mxu1  ;;  %v2289_v31 = vmul.f32 %v3023_v55, %v3023_v55 }
 0x171   : > { %v2061_v18 = vsel %vm2003_vm5, %v2045_v20, 0.0  ;;  %v2007_v17 = vadd.f32 %v2006_v33, %v2005_v57  ;;  %v3044_v40 = vadd.f32 %v2997_v59, %v2867_v52  ;;  %v1918_v1 = vpop.f32.mrb[3].mxu0  ;;  %v2251_v5 = vsel %vm2003_vm5, %v2178_v26, 0.0 }
 0x172   : > { %v2060_v32 = vsel %vm2003_vm5, %v2044_v45, 0.0  ;;  %v3045_v4 = vadd.f32 %v1918_v1, %v1040_v54  ;;  %v2288_v11 = vmul.f32 %v2178_v26, %v2178_v26  ;;  %v2252_v8 = vadd.f32 %v2251_v5, %v2250_v51 }
 0x173   : > { %v2062_v63 = vadd.f32 %v2061_v18, %v2060_v32  ;;  %v2047_v50 = vmul.f32 %v3044_v40, %v3044_v40  ;;  %v3026_v9 = vpop.f32.mrb[20].mxu1  ;;  %v2253_v15 = vsel %vm2003_vm5, %v3023_v55, 0.0  ;;  %v2010_v29 = vsel %vm2003_vm5, %v3044_v40, 0.0 }
 0x174   : > { %v2008_v14 = vsel %vm2003_vm5, %v3045_v4, 0.0  ;;  %v2046_v6 = vmul.f32 %v3045_v4, %v3045_v4  ;;  %v2305_v2 = vsel %vm2003_vm5, %v2288_v11, 0.0  ;;  %v3000_v3 = vpop.f32.mrb[4].mxu0  ;;  %v2188_v37 = vpop.f32.mrb[21].mxu1  ;;  %v2307_v34 = vsel %vm2003_vm5, %v2289_v31, 0.0 }
 0x175   : > { %v2009_v28 = vadd.f32 %v2008_v14, %v2007_v17  ;;  %v2306_v61 = vadd.f32 %v2305_v2, %v2304_v58  ;;  %v3046_v0 = vadd.f32 %v3000_v3, %v2870_v60  ;;  %v1928_v22 = vpop.f32.mrb[5].mxu0  ;;  %v2065_v44 = vsel %vm2003_vm5, %v2047_v50, 0.0 }
 0x176   : > { %v2063_v36 = vsel %vm2003_vm5, %v2046_v6, 0.0  ;;  %v3047_v38 = vadd.f32 %v1928_v22, %v1050_v62  ;;  %v2291_v52 = vmul.f32 %v3026_v9, %v3026_v9  ;;  %v2257_v23 = vsel %vm2003_vm5, %v3026_v9, 0.0 }
 0x177   : > { %v2064_v46 = vadd.f32 %v2063_v36, %v2062_v63  ;;  %v2011_v54 = vadd.f32 %v2010_v29, %v2009_v28  ;;  %v3029_v24 = vpop.f32.mrb[22].mxu1  ;;  %v2254_v60 = vadd.f32 %v2253_v15, %v2252_v8  ;;  %v2049_v42 = vmul.f32 %v3046_v0, %v3046_v0 }
 0x178   : > { %v2012_v27 = vsel %vm2003_vm5, %v3047_v38, 0.0  ;;  %v2048_v56 = vmul.f32 %v3047_v38, %v3047_v38  ;;  %v3003_v35 = vpop.f32.mrb[6].mxu0  ;;  %v2198_v12 = vpop.f32.mrb[23].mxu1  ;;  %v2255_v19 = vsel %vm2003_vm5, %v2188_v37, 0.0  ;;  %v2290_v33 = vmul.f32 %v2188_v37, %v2188_v37 }
 0x179   : > { %v2013_v43 = vadd.f32 %v2012_v27, %v2011_v54  ;;  %v2066_v47 = vadd.f32 %v2065_v44, %v2064_v46  ;;  %v1938_v62 = vpop.f32.mrb[7].mxu0  ;;  %v2256_v51 = vadd.f32 %v2255_v19, %v2254_v60  ;;  %v2308_v20 = vadd.f32 %v2307_v34, %v2306_v61 }
 0x17a   : > { %v2067_v49 = vsel %vm2003_vm5, %v2048_v56, 0.0  ;;  %v2014_v41 = vsel %vm2003_vm5, %v3046_v0, 0.0  ;;  %v2311_v55 = vsel %vm2003_vm5, %v2291_v52, 0.0  ;;  %v3048_v45 = vadd.f32 %v3003_v35, %v3961_v7 }
 0x17b   : > { %v2068_v57 = vadd.f32 %v2067_v49, %v2066_v47  ;;  %v3032_v58 = vpop.f32.mrb[24].mxu1  ;;  %v2309_v59 = vsel %vm2003_vm5, %v2290_v33, 0.0  ;;  %v3049_v26 = vadd.f32 %v1938_v62, %v3963_v10  ;;  %v2015_v18 = vadd.f32 %v2014_v41, %v2013_v43 }
 0x17c   : > { %v2258_v17 = vadd.f32 %v2257_v23, %v2256_v51  ;;  %v3006_v40 = vpop.f32.mrb[8].mxu0  ;;  %v2208_v31 = vpop.f32.mrb[25].mxu1  ;;  %v2069_v1 = vsel %vm2003_vm5, %v2049_v42, 0.0  ;;  %v2310_v32 = vadd.f32 %v2309_v59, %v2308_v20  ;;  %v2051_v4 = vmul.f32 %v3048_v45, %v3048_v45 }
 0x17d   : > { %v2293_v5 = vmul.f32 %v3029_v24, %v3029_v24  ;;  %v1948_v11 = vpop.f32.mrb[9].mxu0  ;;  %v2016_v63 = vsel %vm2003_vm5, %v3049_v26, 0.0  ;;  %v2050_v50 = vmul.f32 %v3049_v26, %v3049_v26  ;;  %v2070_v9 = vadd.f32 %v2069_v1, %v2068_v57 }
 0x17e   : > { %v2259_v7 = vsel %vm2003_vm5, %v2198_v12, 0.0  ;;  %v2261_v14 = vsel %vm2003_vm5, %v3029_v24, 0.0  ;;  %v2017_v6 = vadd.f32 %v2016_v63, %v2015_v18  ;;  %v2292_v8 = vmul.f32 %v2198_v12, %v2198_v12 }
 0x17f   : > { %v2260_v10 = vadd.f32 %v2259_v7, %v2258_v17  ;;  %v3035_v2 = vpop.f32.mrb[26].mxu1  ;;  %v2018_v3 = vsel %vm2003_vm5, %v3048_v45, 0.0  ;;  %v2071_v37 = vsel %vm2003_vm5, %v2050_v50, 0.0  ;;  %v2312_v15 = vadd.f32 %v2311_v55, %v2310_v32 }
 0x180   : > { %v3050_v28 = vadd.f32 %v3006_v40, %v3965_v16  ;;  %v3009_v61 = vpop.f32.mrb[10].mxu0  ;;  %v2218_v0 = vpop.f32.mrb[27].mxu1  ;;  %v2315_v22 = vsel %vm2003_vm5, %v2293_v5, 0.0  ;;  %v2072_v29 = vadd.f32 %v2071_v37, %v2070_v9  ;;  %v2313_v34 = vsel %vm2003_vm5, %v2292_v8, 0.0 }
 0x181   : > { %v3051_v36 = vadd.f32 %v1948_v11, %v3967_v30  ;;  %v1958_v38 = vpop.f32.mrb[11].mxu0  ;;  %v2073_v44 = vsel %vm2003_vm5, %v2051_v4, 0.0  ;;  %v2314_v46 = vadd.f32 %v2313_v34, %v2312_v15  ;;  %v2295_v52 = vmul.f32 %v3032_v58, %v3032_v58 }
 0x182   : > { %v2019_v54 = vadd.f32 %v2018_v3, %v2017_v6  ;;  %v2053_v24 = vmul.f32 %v3050_v28, %v3050_v28  ;;  %v2074_v16 = vadd.f32 %v2073_v44, %v2072_v29  ;;  %v2265_v60 = vsel %vm2003_vm5, %v3032_v58, 0.0 }
 0x183   : > { %v2020_v23 = vsel %vm2003_vm5, %v3051_v36, 0.0  ;;  %v2052_v27 = vmul.f32 %v3051_v36, %v3051_v36  ;;  %v3038_v56 = vpop.f32.mrb[28].mxu1  ;;  %v2262_v12 = vadd.f32 %v2261_v14, %v2260_v10  ;;  %v2263_v42 = vsel %vm2003_vm5, %v2208_v31, 0.0 }
 0x184   : > { %v2021_v35 = vadd.f32 %v2020_v23, %v2019_v54  ;;  %v3012_v43 = vpop.f32.mrb[12].mxu0  ;;  %v2228_v30 = vpop.f32.mrb[29].mxu1  ;;  %v2294_v19 = vmul.f32 %v2208_v31, %v2208_v31  ;;  %v2316_v62 = vadd.f32 %v2315_v22, %v2314_v46  ;;  %v3052_v49 = vadd.f32 %v3009_v61, %v3969_v13 }
 0x185   : > { %v2075_v47 = vsel %vm2003_vm5, %v2052_v27, 0.0  ;;  %v1968_v51 = vpop.f32.mrb[13].mxu0  ;;  %v2022_v33 = vsel %vm2003_vm5, %v3050_v28, 0.0  ;;  %v2319_v20 = vsel %vm2003_vm5, %v2295_v52, 0.0  ;;  %v2264_v55 = vadd.f32 %v2263_v42, %v2262_v12 }
 0x186   : > { %v2076_v41 = vadd.f32 %v2075_v47, %v2074_v16  ;;  %v2077_v57 = vsel %vm2003_vm5, %v2053_v24, 0.0  ;;  %v2317_v45 = vsel %vm2003_vm5, %v2294_v19, 0.0  ;;  %v2269_v58 = vsel %vm2003_vm5, %v3035_v2, 0.0 }
 0x187   : > { %v3053_v59 = vadd.f32 %v1958_v38, %v3971_v53  ;;  %v3041_v26 = vpop.f32.mrb[30].mxu1  ;;  %v2318_v18 = vadd.f32 %v2317_v45, %v2316_v62  ;;  %v2297_v17 = vmul.f32 %v3035_v2, %v3035_v2  ;;  %v2023_v40 = vadd.f32 %v2022_v33, %v2021_v35 }
 0x188   : > { %v2078_v13 = vadd.f32 %v2077_v57, %v2076_v41  ;;  %v3015_v31 = vpop.f32.mrb[14].mxu0  ;;  %v2238_v1 = vpop.f32.mrb[31].mxu1  ;;  %v2055_v32 = vmul.f32 %v3052_v49, %v3052_v49  ;;  %v2266_v11 = vadd.f32 %v2265_v60, %v2264_v55  ;;  %v2267_v9 = vsel %vm2003_vm5, %v2218_v0, 0.0 }
 0x189   : > { %v2024_v4 = vsel %vm2003_vm5, %v3053_v59, 0.0  ;;  %v2054_v5 = vmul.f32 %v3053_v59, %v3053_v59  ;;  %v1978_v63 = vpop.f32.mrb[15].mxu0  ;;  %v2296_v7 = vmul.f32 %v2218_v0, %v2218_v0  ;;  %v2320_v14 = vadd.f32 %v2319_v20, %v2318_v18 }
 0x18a   : > { %v2025_v50 = vadd.f32 %v2024_v4, %v2023_v40  ;;  %v2026_v53 = vsel %vm2003_vm5, %v3052_v49, 0.0  ;;  %v2268_v10 = vadd.f32 %v2267_v9, %v2266_v11  ;;  %v3054_v8 = vadd.f32 %v3012_v43, %v3973_v48 }
 0x18b   : > { %v2079_v6 = vsel %vm2003_vm5, %v2054_v5, 0.0  ;;  %v2323_v2 = vsel %vm2003_vm5, %v2297_v17, 0.0  ;;  %v2321_v37 = vsel %vm2003_vm5, %v2296_v7, 0.0  ;;  %v3055_v15 = vadd.f32 %v1968_v51, %v3975_v39 }
 0x18c   : > { %v2080_v3 = vadd.f32 %v2079_v6, %v2078_v13  ;;  %v2081_v28 = vsel %vm2003_vm5, %v2055_v32, 0.0  ;;  %v2322_v61 = vadd.f32 %v2321_v37, %v2320_v14  ;;  %v2299_v22 = vmul.f32 %v3038_v56, %v3038_v56 }
 0x18d   : > { %v2027_v0 = vadd.f32 %v2026_v53, %v2025_v50  ;;  %v2057_v29 = vmul.f32 %v3054_v8, %v3054_v8  ;;  %v2028_v34 = vsel %vm2003_vm5, %v3055_v15, 0.0  ;;  %v2056_v36 = vmul.f32 %v3055_v15, %v3055_v15 }
 0x18e   : > { %v2082_v38 = vadd.f32 %v2081_v28, %v2080_v3  ;;  %v2273_v44 = vsel %vm2003_vm5, %v3038_v56, 0.0  ;;  %v2270_v46 = vadd.f32 %v2269_v58, %v2268_v10  ;;  %v2271_v52 = vsel %vm2003_vm5, %v2228_v30, 0.0 }
 0x18f   : > { %v2029_v48 = vadd.f32 %v2028_v34, %v2027_v0  ;;  %v2083_v54 = vsel %vm2003_vm5, %v2056_v36, 0.0  ;;  %v2298_v24 = vmul.f32 %v2228_v30, %v2228_v30  ;;  %v2324_v39 = vadd.f32 %v2323_v2, %v2322_v61 }
 0x190   : > { %v3056_v23 = vadd.f32 %v3015_v31, %v3977_v21  ;;  %v2030_v27 = vsel %vm2003_vm5, %v3054_v8, 0.0  ;;  %v2327_v16 = vsel %vm2003_vm5, %v2299_v22, 0.0  ;;  %v2084_v60 = vadd.f32 %v2083_v54, %v2082_v38 }
 0x191   : > { %v2272_v35 = vadd.f32 %v2271_v52, %v2270_v46  ;;  %v2085_v12 = vsel %vm2003_vm5, %v2057_v29, 0.0  ;;  %v2325_v56 = vsel %vm2003_vm5, %v2298_v24, 0.0  ;;  %v2277_v42 = vsel %vm2003_vm5, %v3041_v26, 0.0 }
 0x192   : > { %v3057_v43 = vadd.f32 %v1978_v63, %v3979_v25  ;;  %v2326_v47 = vadd.f32 %v2325_v56, %v2324_v39  ;;  %v2301_v19 = vmul.f32 %v3041_v26, %v3041_v26  ;;  %v2031_v30 = vadd.f32 %v2030_v27, %v2029_v48 }
 0x193   : > { %v2086_v62 = vadd.f32 %v2085_v12, %v2084_v60  ;;  %v2059_v49 = vmul.f32 %v3056_v23, %v3056_v23  ;;  %v2274_v33 = vadd.f32 %v2273_v44, %v2272_v35  ;;  %v2275_v41 = vsel %vm2003_vm5, %v2238_v1, 0.0 }
 0x194   : > { %v2032_v21 = vsel %vm2003_vm5, %v3057_v43, 0.0  ;;  %v2058_v51 = vmul.f32 %v3057_v43, %v3057_v43  ;;  %v2300_v55 = vmul.f32 %v2238_v1, %v2238_v1  ;;  %v2328_v57 = vadd.f32 %v2327_v16, %v2326_v47 }
 0x195   : > { %v2033_v20 = vadd.f32 %v2032_v21, %v2031_v30  ;;  %v2034_v45 = vsel %vm2003_vm5, %v3056_v23, 0.0  ;;  %v2276_v59 = vadd.f32 %v2275_v41, %v2274_v33  ;;  %v2331_v25 = vsel %vm2003_vm5, %v2301_v19, 0.0 }
 0x196   : > { %v2087_v58 = vsel %vm2003_vm5, %v2058_v51, 0.0  ;;  %v2329_v17 = vsel %vm2003_vm5, %v2300_v55, 0.0  ;;  %v2089_v40 = vsel %vm2003_vm5, %v2059_v49, 0.0 }
 0x197   : > { %v2035_v26 = vadd.f32 %v2034_v45, %v2033_v20  ;;  %v2088_v18 = vadd.f32 %v2087_v58, %v2086_v62  ;;  %v2278_v13 = vadd.f32 %v2277_v42, %v2276_v59  ;;  %v2330_v31 = vadd.f32 %v2329_v17, %v2328_v57 }
 0x199   : > { %v2036_v32 = vrot.slane %v2035_v26, 4  ;;  %v2090_v4 = vadd.f32 %v2089_v40, %v2088_v18  ;;  %v2279_v5 = vrot.slane %v2278_v13, 4  ;;  %v2332_v1 = vadd.f32 %v2331_v25, %v2330_v31 }
 0x19b   : > { %v2037_v11 = vadd.f32 %v2036_v32, %v2035_v26  ;;  %v2091_v63 = vrot.slane %v2090_v4, 4  ;;  %v2280_v50 = vadd.f32 %v2279_v5, %v2278_v13  ;;  %v2333_v9 = vrot.slane %v2332_v1, 4 }
 0x19d   : > { %v2038_v7 = vrot.slane %v2037_v11, 2  ;;  %v2092_v14 = vadd.f32 %v2091_v63, %v2090_v4  ;;  %v2281_v53 = vrot.slane %v2280_v50, 2  ;;  %v2334_v6 = vadd.f32 %v2333_v9, %v2332_v1 }
 0x19f   : > { %v2039_v10 = vadd.f32 %v2038_v7, %v2037_v11  ;;  %v2093_v8 = vrot.slane %v2092_v14, 2  ;;  %v2282_v2 = vadd.f32 %v2281_v53, %v2280_v50  ;;  %v2335_v3 = vrot.slane %v2334_v6, 2 }
 0x1a1   : > { %v2040_v37 = vrot.slane %v2039_v10, 1  ;;  %v2094_v15 = vadd.f32 %v2093_v8, %v2092_v14  ;;  %v2283_v28 = vrot.slane %v2282_v2, 1  ;;  %v2336_v61 = vadd.f32 %v2335_v3, %v2334_v6 }
 0x1a3   : > { %v2041_v22 = vadd.f32 %v2040_v37, %v2039_v10  ;;  %v2095_v0 = vrot.slane %v2094_v15, 1  ;;  %v2284_v29 = vadd.f32 %v2283_v28, %v2282_v2  ;;  %v2337_v34 = vrot.slane %v2336_v61, 1 }
 0x1a5   : > { %2043 = vst.msk [vmem:[%s3950_s20] sm:$0x1] %vm2042_vm6, %v2041_v22  ;;  %v2096_v36 = vadd.f32 %v2095_v0, %v2094_v15  ;;  %2285 = vst.msk [vmem:[%s3957_s23] sm:$0x1] %vm2042_vm6, %v2284_v29  ;;  %v2338_v38 = vadd.f32 %v2337_v34, %v2336_v61 }
 0x1a7   : > { %2097 = vst.msk [vmem:[%s3950_s20 + $0x1] sm:$0x1] %vm2042_vm6, %v2096_v36  ;;  %2339 = vst.msk [vmem:[%s3957_s23 + $0x1] sm:$0x1] %vm2042_vm6, %v2338_v38 }
 0x1a8 PF: > { %s15_s15 = sadd.s32 1, %s3186_s15  }
 0x1a9   : > { %p12_p4 = scmp.ge.s32.totalorder %s15_s15, 6  }
 0x1ab   :  { %14 = sbr.rel (!%p12_p4) target bundleno = 1 (0x1), region = 82 }

</bundles_post_ra>
